<compile_context>
chip_gen: v5e
topology: v5e:2x2
jax: 0.10.0
libtpu: 0.0.40
codegen_flags: <defaults>
</compile_context>

<pallas_src>
import jax
import jax.numpy as jnp
from jax.experimental import pallas as pl
from jax.experimental.pallas import tpu as pltpu


NEG_INF = -1e30


# -----------------------------------------------------------------------------
# Fused decode kernel: one grid step == one decode step
# -----------------------------------------------------------------------------
def fused_decode_kernel(
    emb_ref,        # (1, N, H)   embedded input token for this decode step
    hid0_ref,       # (N, H)      initial hidden state
    enc_ref,        # (N, T, H)   encoder outputs (batch-major)
    vat_w_ref,      # (1, 1, H)
    vat_b_ref,      # (1, 1)
    comb_wT_ref,    # (2, H, H)   attn_combine split: [W_emb^T, W_ctx^T]
    comb_b_ref,     # (1, H)
    wihT_ref,       # (3, H, H)   GRU input weights  [r, z, n], transposed
    whhT_ref,       # (3, H, H)   GRU hidden weights [r, z, n], transposed
    bih_ref,        # (3, 1, H)
    bhh_ref,        # (3, 1, H)
    out_wT_ref,     # (H, Cp)     output projection, class dim zero-padded
    out_b_ref,      # (1, Cp)     pad columns = -1e30 (keeps log_softmax exact)
    logp_ref,       # (1, N, Cp)  out: per-step log-probs (lane-dense)
    attn_ref,       # (1, N, T)   out: per-step attention weights
    hidn_ref,       # (N, H)      out: final hidden state
    h_carry,        # VMEM scratch (N, H): hidden carried across decode steps
):
    s = pl.program_id(0)
    N, T, H = enc_ref.shape

    # First decode step: load the initial hidden state into the VMEM carry.
    @pl.when(s == 0)
    def _():
        h_carry[...] = hid0_ref[...]

    hid = h_carry[...]                                            # (N, H)
    emb = emb_ref[0]                                              # (N, H)
    enc = enc_ref[...]                                            # (N, T, H)

    # ---- additive attention: softmax over time of vat(tanh(hidden + enc)) ---
    alpha = jnp.tanh(hid[:, None, :] + enc)                       # (N, T, H)
    scores = jnp.sum(alpha * vat_w_ref[...], axis=-1) + vat_b_ref[...]  # (N, T)
    m = jnp.max(scores, axis=-1, keepdims=True)
    e = jnp.exp(scores - m)
    denom = jnp.sum(e, axis=-1, keepdims=True)
    attn_w = e * pl.reciprocal(denom, approx=True)                # (N, T)
    attn_ref[0] = attn_w

    # Context vector as a batched MXU matmul (not VPU mul + XLU reduce).
    ctx = jnp.einsum(
        "nqt,nth->nqh", attn_w.reshape(N, 1, T), enc,
        preferred_element_type=jnp.float32,
    ).reshape(N, H)                                               # (N, H)

    # ---- attn_combine(cat([emb, ctx])) + ReLU (concat-free split matmuls) ---
    x = (jnp.dot(emb, comb_wT_ref[0], preferred_element_type=jnp.float32)
         + jnp.dot(ctx, comb_wT_ref[1], preferred_element_type=jnp.float32)
         + comb_b_ref[...])
    x = jnp.maximum(x, 0.0)                                       # (N, H)

    # ---- single-step GRU (PyTorch gate order r, z, n); no lane slicing ------
    gi_r = jnp.dot(x, wihT_ref[0], preferred_element_type=jnp.float32) + bih_ref[0]
    gi_z = jnp.dot(x, wihT_ref[1], preferred_element_type=jnp.float32) + bih_ref[1]
    gi_n = jnp.dot(x, wihT_ref[2], preferred_element_type=jnp.float32) + bih_ref[2]
    gh_r = jnp.dot(hid, whhT_ref[0], preferred_element_type=jnp.float32) + bhh_ref[0]
    gh_z = jnp.dot(hid, whhT_ref[1], preferred_element_type=jnp.float32) + bhh_ref[1]
    gh_n = jnp.dot(hid, whhT_ref[2], preferred_element_type=jnp.float32) + bhh_ref[2]
    r = jax.nn.sigmoid(gi_r + gh_r)
    z = jax.nn.sigmoid(gi_z + gh_z)
    n = jnp.tanh(gi_n + r * gh_n)
    h_new = (1.0 - z) * n + z * hid                               # (N, H)

    h_carry[...] = h_new
    hidn_ref[...] = h_new

    # ---- output projection + log_softmax over the padded (lane-dense) dim ---
    logits = (jnp.dot(h_new, out_wT_ref[...], preferred_element_type=jnp.float32)
              + out_b_ref[...])                                   # (N, Cp)
    mo = jnp.max(logits, axis=-1, keepdims=True)
    lse = mo + jnp.log(jnp.sum(jnp.exp(logits - mo), axis=-1, keepdims=True))
    logp_ref[0] = logits - lse


# -----------------------------------------------------------------------------
# pallas_call builder
# -----------------------------------------------------------------------------
def build_fused_decoder(S, N, T, H, Cp):
    const2 = lambda s: (0, 0)
    const3 = lambda s: (0, 0, 0)
    grid_spec = pltpu.PrefetchScalarGridSpec(
        num_scalar_prefetch=0,
        grid=(S,),
        in_specs=[
            pl.BlockSpec((1, N, H), lambda s: (s, 0, 0)),   # per-step embedding
            pl.BlockSpec((N, H), const2),                   # initial hidden
            pl.BlockSpec((N, T, H), const3),                # encoder outputs
            pl.BlockSpec((1, 1, H), const3),                # vat_w
            pl.BlockSpec((1, 1), const2),                   # vat_b
            pl.BlockSpec((2, H, H), const3),                # comb_wT (split)
            pl.BlockSpec((1, H), const2),                   # comb_b
            pl.BlockSpec((3, H, H), const3),                # wihT (per gate)
            pl.BlockSpec((3, H, H), const3),                # whhT (per gate)
            pl.BlockSpec((3, 1, H), const3),                # bih
            pl.BlockSpec((3, 1, H), const3),                # bhh
            pl.BlockSpec((H, Cp), const2),                  # out_wT (padded)
            pl.BlockSpec((1, Cp), const2),                  # out_b  (padded)
        ],
        out_specs=[
            pl.BlockSpec((1, N, Cp), lambda s: (s, 0, 0)),  # log-probs per step
            pl.BlockSpec((1, N, T), lambda s: (s, 0, 0)),   # attn weights
            pl.BlockSpec((N, H), const2),                   # final hidden
        ],
        scratch_shapes=[pltpu.VMEM((N, H), jnp.float32)],   # hidden carry
    )
    return pl.pallas_call(
        fused_decode_kernel,
        out_shape=(
            jax.ShapeDtypeStruct((S, N, Cp), jnp.float32),
            jax.ShapeDtypeStruct((S, N, T), jnp.float32),
            jax.ShapeDtypeStruct((N, H), jnp.float32),
        ),
        grid_spec=grid_spec,
        compiler_params=pltpu.CompilerParams(
            dimension_semantics=("arbitrary",)),   # sequential hidden-state dep
    )


# -----------------------------------------------------------------------------
# Parameter packing (once per sequence; pre-split / pre-transpose / pad)
# -----------------------------------------------------------------------------
def pack_params(params):
    H = params["comb_b"].shape[0]
    C = params["out_w"].shape[0]
    Cp = ((C + 127) // 128) * 128
    comb_w = params["comb_w"]                       # (H, 2H)
    w_ih, w_hh = params["w_ih"], params["w_hh"]     # (3H, H)
    packed = dict(
        vat_w=params["vat_w"].reshape(1, 1, H),
        vat_b=params["vat_b"].reshape(1, 1),
        comb_wT=jnp.stack([comb_w[:, :H].T, comb_w[:, H:].T]),            # (2,H,H)
        comb_b=params["comb_b"].reshape(1, H),
        wihT=jnp.stack([w_ih[g * H:(g + 1) * H].T for g in range(3)]),    # (3,H,H)
        whhT=jnp.stack([w_hh[g * H:(g + 1) * H].T for g in range(3)]),    # (3,H,H)
        bih=params["b_ih"].reshape(3, 1, H),
        bhh=params["b_hh"].reshape(3, 1, H),
        out_wT=jnp.pad(params["out_w"].T, ((0, 0), (0, Cp - C))),         # (H,Cp)
        out_b=jnp.pad(params["out_b"], (0, Cp - C),
                      constant_values=NEG_INF).reshape(1, Cp),            # (1,Cp)
    )
    return packed, Cp


# -----------------------------------------------------------------------------
# Wrappers
# -----------------------------------------------------------------------------
@jax.jit
def attention_decode_fused(tokens_seq, hidden, encoder_outputs, params):
    """Teacher-forced multi-step decode fused into ONE pallas_call.

    tokens_seq: (S, N) int32; hidden: (1, N, H); encoder_outputs: (T, N, H).
    Returns logp (S, N, C), attn (S, N, T), final hidden (1, N, H).
    """
    S, N = tokens_seq.shape
    T, _, H = encoder_outputs.shape
    C = params["out_w"].shape[0]
    packed, Cp = pack_params(params)

    # Per-sequence glue (amortized over all decode steps): embedding gather for
    # all tokens + one transpose to batch-major encoder outputs.
    # TODO(synk): dropout(p=0.1) on the embeddings is training-only; identity in eval.
    emb_all = jnp.take(params["embedding"], tokens_seq.reshape(-1), axis=0)
    emb_all = emb_all.reshape(S, N, H)
    enc_bth = jnp.transpose(encoder_outputs, (1, 0, 2))             # (N, T, H)

    decode = build_fused_decoder(S, N, T, H, Cp)
    logp_p, attn_all, hid_final = decode(
        emb_all, hidden[0], enc_bth,
        packed["vat_w"], packed["vat_b"],
        packed["comb_wT"], packed["comb_b"],
        packed["wihT"], packed["whhT"], packed["bih"], packed["bhh"],
        packed["out_wT"], packed["out_b"],
    )
    return logp_p[:, :, :C], attn_all, hid_final[None]


def attention_forward(tokens, hidden, encoder_outputs, params):
    """Single decode step — exact equivalent of the PyTorch module's forward.
    tokens: (N,) int32; hidden: (1,N,H); encoder_outputs: (T,N,H).
    Returns logp (N, C), new hidden (1, N, H), attn weights (N, 1, T)."""
    logp, attn, hid = attention_decode_fused(tokens[None], hidden,
                                             encoder_outputs, params)
    return logp[0], hid, attn[0][:, None, :]


# -----------------------------------------------------------------------------
# Pure-JAX reference (mirror of the PyTorch forward) + params
# -----------------------------------------------------------------------------
def init_params(key, H, C):
    ks = jax.random.split(key, 9)
    s = 0.1
    return {
        "embedding": jax.random.normal(ks[0], (C, H), jnp.float32) * s,
        "vat_w":     jax.random.normal(ks[1], (1, H), jnp.float32) * s,
        "vat_b":     jax.random.normal(ks[2], (1,), jnp.float32) * s,
        "comb_w":    jax.random.normal(ks[3], (H, 2 * H), jnp.float32) * s,
        "comb_b":    jax.random.normal(ks[4], (H,), jnp.float32) * s,
        "w_ih":      jax.random.normal(ks[5], (3 * H, H), jnp.float32) * s,
        "w_hh":      jax.random.normal(ks[6], (3 * H, H), jnp.float32) * s,
        "b_ih":      jax.random.normal(ks[7], (3 * H,), jnp.float32) * s,
        "b_hh":      jax.random.normal(ks[8], (3 * H,), jnp.float32) * s,
        "out_w":     jax.random.normal(jax.random.fold_in(key, 100), (C, H), jnp.float32) * s,
        "out_b":     jax.random.normal(jax.random.fold_in(key, 101), (C,), jnp.float32) * s,
    }


def reference_forward(tokens, hidden, encoder_outputs, params):
    T, N, H = encoder_outputs.shape
    emb = params["embedding"][tokens]                                    # (N, H)
    alpha = hidden + encoder_outputs                                     # (T, N, H)
    alpha = alpha.reshape(-1, H)
    scores = jnp.tanh(alpha) @ params["vat_w"].T + params["vat_b"]       # (T*N, 1)
    attn_w = jnp.transpose(scores.reshape(T, 1, N), (2, 1, 0))           # (N, 1, T)
    attn_w = jax.nn.softmax(attn_w, axis=2)
    attn_applied = jnp.matmul(attn_w, jnp.transpose(encoder_outputs, (1, 0, 2)))
    out = jnp.concatenate([emb, attn_applied[:, 0, :]], axis=1)          # (N, 2H)
    out = jax.nn.relu(out @ params["comb_w"].T + params["comb_b"])       # (N, H)
    h = hidden[0]
    gi = out @ params["w_ih"].T + params["b_ih"]
    gh = h @ params["w_hh"].T + params["b_hh"]
    r = jax.nn.sigmoid(gi[:, :H] + gh[:, :H])
    z = jax.nn.sigmoid(gi[:, H:2 * H] + gh[:, H:2 * H])
    n = jnp.tanh(gi[:, 2 * H:] + r * gh[:, 2 * H:])
    h_new = (1.0 - z) * n + z * h
    logits = h_new @ params["out_w"].T + params["out_b"]
    logp = jax.nn.log_softmax(logits, axis=1)
    return logp, h_new[None], attn_w


def reference_decode(tokens_seq, hidden, encoder_outputs, params):
    logps, attns = [], []
    for s in range(tokens_seq.shape[0]):
        logp, hidden, attn = reference_forward(tokens_seq[s], hidden,
                                               encoder_outputs, params)
        logps.append(logp)
        attns.append(attn[:, 0, :])
    return jnp.stack(logps), jnp.stack(attns), hidden


# -----------------------------------------------------------------------------
if __name__ == "__main__":
    # shapes consistent with the module: hidden=in_channels=32, num_classes=16,
    # time_step T=8, batch N=2, S=5 teacher-forced decode steps
    N, T, H, C, S = 2, 8, 32, 16, 5
    key = jax.random.PRNGKey(0)
    k_tok, k_enc, k_par = jax.random.split(key, 3)

    tokens_seq = jax.random.randint(k_tok, (S, N), 0, C, dtype=jnp.int32)
    encoder_outputs = jax.random.normal(k_enc, (T, N, H), jnp.float32)
    hidden0 = jnp.zeros((1, N, H), jnp.float32)        # module.initHidden(N)
    params = init_params(k_par, H, C)

    # tolerance is loosened vs f32-exact because the softmax normalization uses
    # the EUP approximate reciprocal (per the performance review).
    tol = dict(atol=5e-3, rtol=5e-3)

    # 1) module-equivalent single decode step
    logp, new_hid, attn_w = attention_forward(tokens_seq[0], hidden0,
                                              encoder_outputs, params)
    jax.block_until_ready((logp, new_hid, attn_w))
    logp_r, new_hid_r, attn_w_r = reference_forward(tokens_seq[0], hidden0,
                                                    encoder_outputs, params)
    assert logp.shape == (N, C) and new_hid.shape == (1, N, H)
    assert attn_w.shape == (N, 1, T)
    assert jnp.allclose(logp, logp_r, **tol)
    assert jnp.allclose(new_hid, new_hid_r, **tol)
    assert jnp.allclose(attn_w, attn_w_r, **tol)

    # 2) fused teacher-forced decode: S steps in ONE pallas_call
    logp_all, attn_all, hid_final = attention_decode_fused(
        tokens_seq, hidden0, encoder_outputs, params)
    jax.block_until_ready((logp_all, attn_all, hid_final))
    logp_all_r, attn_all_r, hid_final_r = reference_decode(
        tokens_seq, hidden0, encoder_outputs, params)
    assert logp_all.shape == (S, N, C) and attn_all.shape == (S, N, T)
    assert hid_final.shape == (1, N, H)
    assert jnp.allclose(logp_all, logp_all_r, **tol)
    assert jnp.allclose(attn_all, attn_all_r, **tol)
    assert jnp.allclose(hid_final, hid_final_r, **tol)

    print("KERNEL_OK")
</pallas_src>

<mosaic_0001>
module attributes {stable_mosaic.version = 11 : i64} {
  func.func @fused_decode_kernel(%arg0: i32, %arg1: memref<1x2x32xf32, #tpu.memory_space<vmem>>, %arg2: memref<2x32xf32, #tpu.memory_space<vmem>>, %arg3: memref<2x8x32xf32, #tpu.memory_space<vmem>>, %arg4: memref<1x1x32xf32, #tpu.memory_space<vmem>>, %arg5: memref<1x1xf32, #tpu.memory_space<vmem>>, %arg6: memref<2x32x32xf32, #tpu.memory_space<vmem>>, %arg7: memref<1x32xf32, #tpu.memory_space<vmem>>, %arg8: memref<3x32x32xf32, #tpu.memory_space<vmem>>, %arg9: memref<3x32x32xf32, #tpu.memory_space<vmem>>, %arg10: memref<3x1x32xf32, #tpu.memory_space<vmem>>, %arg11: memref<3x1x32xf32, #tpu.memory_space<vmem>>, %arg12: memref<32x128xf32, #tpu.memory_space<vmem>>, %arg13: memref<1x128xf32, #tpu.memory_space<vmem>>, %arg14: memref<1x2x128xf32, #tpu.memory_space<vmem>>, %arg15: memref<1x2x8xf32, #tpu.memory_space<vmem>>, %arg16: memref<2x32xf32, #tpu.memory_space<vmem>>, %arg17: memref<2x32xf32, #tpu.memory_space<vmem>>) attributes {dimension_semantics = [#tpu.dimension_semantics<arbitrary>], iteration_bounds = array<i64: 1>, scalar_prefetch = 0 : i64, scratch_operands = 1 : i64, tpu.core_type = #tpu.core_type<tc>, window_params = [{transform_indices = @transform_0, window_bounds = array<i64: 1, 2, 32>}, {pipeline_mode = #tpu.pipeline_mode<synchronous>, transform_indices = @transform_1, window_bounds = array<i64: 2, 32>}, {pipeline_mode = #tpu.pipeline_mode<synchronous>, transform_indices = @transform_2, window_bounds = array<i64: 2, 8, 32>}, {pipeline_mode = #tpu.pipeline_mode<synchronous>, transform_indices = @transform_3, window_bounds = array<i64: 1, 1, 32>}, {pipeline_mode = #tpu.pipeline_mode<synchronous>, transform_indices = @transform_4, window_bounds = array<i64: 1, 1>}, {pipeline_mode = #tpu.pipeline_mode<synchronous>, transform_indices = @transform_5, window_bounds = array<i64: 2, 32, 32>}, {pipeline_mode = #tpu.pipeline_mode<synchronous>, transform_indices = @transform_6, window_bounds = array<i64: 1, 32>}, {pipeline_mode = #tpu.pipeline_mode<synchronous>, transform_indices = @transform_7, window_bounds = array<i64: 3, 32, 32>}, {pipeline_mode = #tpu.pipeline_mode<synchronous>, transform_indices = @transform_8, window_bounds = array<i64: 3, 32, 32>}, {pipeline_mode = #tpu.pipeline_mode<synchronous>, transform_indices = @transform_9, window_bounds = array<i64: 3, 1, 32>}, {pipeline_mode = #tpu.pipeline_mode<synchronous>, transform_indices = @transform_10, window_bounds = array<i64: 3, 1, 32>}, {pipeline_mode = #tpu.pipeline_mode<synchronous>, transform_indices = @transform_11, window_bounds = array<i64: 32, 128>}, {pipeline_mode = #tpu.pipeline_mode<synchronous>, transform_indices = @transform_12, window_bounds = array<i64: 1, 128>}, {transform_indices = @transform_13, window_bounds = array<i64: 1, 2, 128>}, {transform_indices = @transform_14, window_bounds = array<i64: 1, 2, 8>}, {pipeline_mode = #tpu.pipeline_mode<synchronous>, transform_indices = @transform_15, window_bounds = array<i64: 2, 32>}]} {
    %c0_i32 = arith.constant 0 : i32
    %0 = arith.cmpi eq, %arg0, %c0_i32 : i32
    %1 = arith.extui %0 : i1 to i32
    %c0_i32_0 = arith.constant 0 : i32
    %2 = arith.cmpi ne, %1, %c0_i32_0 : i32
    scf.if %2 {
      %c0_87 = arith.constant 0 : index
      %c0_88 = arith.constant 0 : index
      %129 = vector.load %arg2[%c0_87, %c0_88] : memref<2x32xf32, #tpu.memory_space<vmem>>, vector<2x32xf32>
      %c0_89 = arith.constant 0 : index
      %c0_90 = arith.constant 0 : index
      %130 = vector.load %arg17[%c0_89, %c0_90] : memref<2x32xf32, #tpu.memory_space<vmem>>, vector<2x32xf32>
      tpu.vector_store %arg17[%c0_89, %c0_90], %129 {strides = array<i32>} : memref<2x32xf32, #tpu.memory_space<vmem>>, vector<2x32xf32>,
    } else {
    }
    %c0 = arith.constant 0 : index
    %c0_1 = arith.constant 0 : index
    %3 = vector.load %arg17[%c0, %c0_1] : memref<2x32xf32, #tpu.memory_space<vmem>>, vector<2x32xf32>
    %c0_2 = arith.constant 0 : index
    %c0_3 = arith.constant 0 : index
    %c0_4 = arith.constant 0 : index
    %4 = vector.load %arg1[%c0_2, %c0_3, %c0_4] : memref<1x2x32xf32, #tpu.memory_space<vmem>>, vector<1x2x32xf32>
    %5 = vector.shape_cast %4 : vector<1x2x32xf32> to vector<2x32xf32>
    %c0_5 = arith.constant 0 : index
    %c0_6 = arith.constant 0 : index
    %c0_7 = arith.constant 0 : index
    %6 = vector.load %arg3[%c0_5, %c0_6, %c0_7] : memref<2x8x32xf32, #tpu.memory_space<vmem>>, vector<2x8x32xf32>
    %7 = vector.shape_cast %3 : vector<2x32xf32> to vector<2x1x32xf32>
    %8 = vector.broadcast %7 : vector<2x1x32xf32> to vector<2x8x32xf32>
    %9 = arith.addf %8, %6 : vector<2x8x32xf32>
    %10 = math.tanh %9 : vector<2x8x32xf32>
    %c0_8 = arith.constant 0 : index
    %c0_9 = arith.constant 0 : index
    %c0_10 = arith.constant 0 : index
    %11 = vector.load %arg4[%c0_8, %c0_9, %c0_10] : memref<1x1x32xf32, #tpu.memory_space<vmem>>, vector<1x1x32xf32>
    %12 = vector.broadcast %11 : vector<1x1x32xf32> to vector<2x8x32xf32>
    %13 = arith.mulf %10, %12 : vector<2x8x32xf32>
    %cst = arith.constant dense<0.000000e+00> : vector<2x8xf32>
    %14 = vector.multi_reduction <add>, %13, %cst [2] : vector<2x8x32xf32> to vector<2x8xf32>
    %c0_11 = arith.constant 0 : index
    %c0_12 = arith.constant 0 : index
    %15 = vector.load %arg5[%c0_11, %c0_12] : memref<1x1xf32, #tpu.memory_space<vmem>>, vector<1x1xf32>
    %16 = vector.broadcast %15 : vector<1x1xf32> to vector<2x8xf32>
    %17 = arith.addf %14, %16 : vector<2x8xf32>
    %cst_13 = arith.constant dense<0xFF800000> : vector<2xf32>
    %18 = vector.multi_reduction <maximumf>, %17, %cst_13 [1] : vector<2x8xf32> to vector<2xf32>
    %19 = vector.shape_cast %18 : vector<2xf32> to vector<2x1xf32>
    %20 = vector.broadcast %19 : vector<2x1xf32> to vector<2x8xf32>
    %21 = arith.subf %17, %20 : vector<2x8xf32>
    %22 = math.exp %21 : vector<2x8xf32>
    %cst_14 = arith.constant dense<0.000000e+00> : vector<2xf32>
    %23 = vector.multi_reduction <add>, %22, %cst_14 [1] : vector<2x8xf32> to vector<2xf32>
    %24 = vector.shape_cast %23 : vector<2xf32> to vector<2x1xf32>
    %25 = tpu.reciprocal %24 {approx = true} : vector<2x1xf32> -> vector<2x1xf32>
    %26 = vector.broadcast %25 : vector<2x1xf32> to vector<2x8xf32>
    %27 = arith.mulf %22, %26 : vector<2x8xf32>
    %c0_15 = arith.constant 0 : index
    %c0_16 = arith.constant 0 : index
    %c0_17 = arith.constant 0 : index
    %28 = vector.load %arg15[%c0_15, %c0_16, %c0_17] : memref<1x2x8xf32, #tpu.memory_space<vmem>>, vector<1x2x8xf32>
    %29 = vector.shape_cast %28 : vector<1x2x8xf32> to vector<2x8xf32>
    %30 = vector.shape_cast %27 : vector<2x8xf32> to vector<1x2x8xf32>
    tpu.vector_store %arg15[%c0_15, %c0_16, %c0_17], %30 {strides = array<i32>} : memref<1x2x8xf32, #tpu.memory_space<vmem>>, vector<1x2x8xf32>,
    %31 = vector.shape_cast %27 : vector<2x8xf32> to vector<2x1x8xf32>
    "tpu.trace_start"() <{level = 10 : i32, message = "nqt,nth->nqh"}> : () -> ()
    %cst_18 = arith.constant dense<0.000000e+00> : vector<2x1x32xf32>
    %32 = tpu.matmul %31, %6, %cst_18 {dimension_numbers = #tpu.dot_dimension_numbers<[2], [1], [1], [2], [0, 0, 0, 1, 1, 2], [0], [0]>} : vector<2x1x8xf32>, vector<2x8x32xf32>, vector<2x1x32xf32> -> vector<2x1x32xf32>
    "tpu.trace_stop"() : () -> ()
    %33 = vector.shape_cast %32 : vector<2x1x32xf32> to vector<2x32xf32>
    %c0_19 = arith.constant 0 : index
    %c0_20 = arith.constant 0 : index
    %c0_21 = arith.constant 0 : index
    %34 = vector.load %arg6[%c0_19, %c0_20, %c0_21] : memref<2x32x32xf32, #tpu.memory_space<vmem>>, vector<1x32x32xf32>
    %35 = vector.shape_cast %34 : vector<1x32x32xf32> to vector<32x32xf32>
    %cst_22 = arith.constant dense<0.000000e+00> : vector<2x32xf32>
    %36 = tpu.matmul %5, %35, %cst_22 {dimension_numbers = #tpu.dot_dimension_numbers<[1], [0], [0], [1], [0, 0, 1, 1], [], []>} : vector<2x32xf32>, vector<32x32xf32>, vector<2x32xf32> -> vector<2x32xf32>
    %c1 = arith.constant 1 : index
    %c0_23 = arith.constant 0 : index
    %c0_24 = arith.constant 0 : index
    %37 = vector.load %arg6[%c1, %c0_23, %c0_24] : memref<2x32x32xf32, #tpu.memory_space<vmem>>, vector<1x32x32xf32>
    %38 = vector.shape_cast %37 : vector<1x32x32xf32> to vector<32x32xf32>
    %cst_25 = arith.constant dense<0.000000e+00> : vector<2x32xf32>
    %39 = tpu.matmul %33, %38, %cst_25 {dimension_numbers = #tpu.dot_dimension_numbers<[1], [0], [0], [1], [0, 0, 1, 1], [], []>} : vector<2x32xf32>, vector<32x32xf32>, vector<2x32xf32> -> vector<2x32xf32>
    %40 = arith.addf %36, %39 : vector<2x32xf32>
    %c0_26 = arith.constant 0 : index
    %c0_27 = arith.constant 0 : index
    %41 = vector.load %arg7[%c0_26, %c0_27] : memref<1x32xf32, #tpu.memory_space<vmem>>, vector<1x32xf32>
    %42 = vector.broadcast %41 : vector<1x32xf32> to vector<2x32xf32>
    %43 = arith.addf %40, %42 : vector<2x32xf32>
    %cst_28 = arith.constant 0.000000e+00 : f32
    %44 = vector.broadcast %cst_28 : f32 to vector<2x32xf32>
    %45 = arith.maximumf %43, %44 : vector<2x32xf32>
    %c0_29 = arith.constant 0 : index
    %c0_30 = arith.constant 0 : index
    %c0_31 = arith.constant 0 : index
    %46 = vector.load %arg8[%c0_29, %c0_30, %c0_31] : memref<3x32x32xf32, #tpu.memory_space<vmem>>, vector<1x32x32xf32>
    %47 = vector.shape_cast %46 : vector<1x32x32xf32> to vector<32x32xf32>
    %cst_32 = arith.constant dense<0.000000e+00> : vector<2x32xf32>
    %48 = tpu.matmul %45, %47, %cst_32 {dimension_numbers = #tpu.dot_dimension_numbers<[1], [0], [0], [1], [0, 0, 1, 1], [], []>} : vector<2x32xf32>, vector<32x32xf32>, vector<2x32xf32> -> vector<2x32xf32>
    %c0_33 = arith.constant 0 : index
    %c0_34 = arith.constant 0 : index
    %c0_35 = arith.constant 0 : index
    %49 = vector.load %arg10[%c0_33, %c0_34, %c0_35] : memref<3x1x32xf32, #tpu.memory_space<vmem>>, vector<1x1x32xf32>
    %50 = vector.shape_cast %49 : vector<1x1x32xf32> to vector<1x32xf32>
    %51 = vector.broadcast %50 : vector<1x32xf32> to vector<2x32xf32>
    %52 = arith.addf %48, %51 : vector<2x32xf32>
    %c1_36 = arith.constant 1 : index
    %c0_37 = arith.constant 0 : index
    %c0_38 = arith.constant 0 : index
    %53 = vector.load %arg8[%c1_36, %c0_37, %c0_38] : memref<3x32x32xf32, #tpu.memory_space<vmem>>, vector<1x32x32xf32>
    %54 = vector.shape_cast %53 : vector<1x32x32xf32> to vector<32x32xf32>
    %cst_39 = arith.constant dense<0.000000e+00> : vector<2x32xf32>
    %55 = tpu.matmul %45, %54, %cst_39 {dimension_numbers = #tpu.dot_dimension_numbers<[1], [0], [0], [1], [0, 0, 1, 1], [], []>} : vector<2x32xf32>, vector<32x32xf32>, vector<2x32xf32> -> vector<2x32xf32>
    %c1_40 = arith.constant 1 : index
    %c0_41 = arith.constant 0 : index
    %c0_42 = arith.constant 0 : index
    %56 = vector.load %arg10[%c1_40, %c0_41, %c0_42] : memref<3x1x32xf32, #tpu.memory_space<vmem>>, vector<1x1x32xf32>
    %57 = vector.shape_cast %56 : vector<1x1x32xf32> to vector<1x32xf32>
    %58 = vector.broadcast %57 : vector<1x32xf32> to vector<2x32xf32>
    %59 = arith.addf %55, %58 : vector<2x32xf32>
    %c2 = arith.constant 2 : index
    %c0_43 = arith.constant 0 : index
    %c0_44 = arith.constant 0 : index
    %60 = vector.load %arg8[%c2, %c0_43, %c0_44] : memref<3x32x32xf32, #tpu.memory_space<vmem>>, vector<1x32x32xf32>
    %61 = vector.shape_cast %60 : vector<1x32x32xf32> to vector<32x32xf32>
    %cst_45 = arith.constant dense<0.000000e+00> : vector<2x32xf32>
    %62 = tpu.matmul %45, %61, %cst_45 {dimension_numbers = #tpu.dot_dimension_numbers<[1], [0], [0], [1], [0, 0, 1, 1], [], []>} : vector<2x32xf32>, vector<32x32xf32>, vector<2x32xf32> -> vector<2x32xf32>
    %c2_46 = arith.constant 2 : index
    %c0_47 = arith.constant 0 : index
    %c0_48 = arith.constant 0 : index
    %63 = vector.load %arg10[%c2_46, %c0_47, %c0_48] : memref<3x1x32xf32, #tpu.memory_space<vmem>>, vector<1x1x32xf32>
    %64 = vector.shape_cast %63 : vector<1x1x32xf32> to vector<1x32xf32>
    %65 = vector.broadcast %64 : vector<1x32xf32> to vector<2x32xf32>
    %66 = arith.addf %62, %65 : vector<2x32xf32>
    %c0_49 = arith.constant 0 : index
    %c0_50 = arith.constant 0 : index
    %c0_51 = arith.constant 0 : index
    %67 = vector.load %arg9[%c0_49, %c0_50, %c0_51] : memref<3x32x32xf32, #tpu.memory_space<vmem>>, vector<1x32x32xf32>
    %68 = vector.shape_cast %67 : vector<1x32x32xf32> to vector<32x32xf32>
    %cst_52 = arith.constant dense<0.000000e+00> : vector<2x32xf32>
    %69 = tpu.matmul %3, %68, %cst_52 {dimension_numbers = #tpu.dot_dimension_numbers<[1], [0], [0], [1], [0, 0, 1, 1], [], []>} : vector<2x32xf32>, vector<32x32xf32>, vector<2x32xf32> -> vector<2x32xf32>
    %c0_53 = arith.constant 0 : index
    %c0_54 = arith.constant 0 : index
    %c0_55 = arith.constant 0 : index
    %70 = vector.load %arg11[%c0_53, %c0_54, %c0_55] : memref<3x1x32xf32, #tpu.memory_space<vmem>>, vector<1x1x32xf32>
    %71 = vector.shape_cast %70 : vector<1x1x32xf32> to vector<1x32xf32>
    %72 = vector.broadcast %71 : vector<1x32xf32> to vector<2x32xf32>
    %73 = arith.addf %69, %72 : vector<2x32xf32>
    %c1_56 = arith.constant 1 : index
    %c0_57 = arith.constant 0 : index
    %c0_58 = arith.constant 0 : index
    %74 = vector.load %arg9[%c1_56, %c0_57, %c0_58] : memref<3x32x32xf32, #tpu.memory_space<vmem>>, vector<1x32x32xf32>
    %75 = vector.shape_cast %74 : vector<1x32x32xf32> to vector<32x32xf32>
    %cst_59 = arith.constant dense<0.000000e+00> : vector<2x32xf32>
    %76 = tpu.matmul %3, %75, %cst_59 {dimension_numbers = #tpu.dot_dimension_numbers<[1], [0], [0], [1], [0, 0, 1, 1], [], []>} : vector<2x32xf32>, vector<32x32xf32>, vector<2x32xf32> -> vector<2x32xf32>
    %c1_60 = arith.constant 1 : index
    %c0_61 = arith.constant 0 : index
    %c0_62 = arith.constant 0 : index
    %77 = vector.load %arg11[%c1_60, %c0_61, %c0_62] : memref<3x1x32xf32, #tpu.memory_space<vmem>>, vector<1x1x32xf32>
    %78 = vector.shape_cast %77 : vector<1x1x32xf32> to vector<1x32xf32>
    %79 = vector.broadcast %78 : vector<1x32xf32> to vector<2x32xf32>
    %80 = arith.addf %76, %79 : vector<2x32xf32>
    %c2_63 = arith.constant 2 : index
    %c0_64 = arith.constant 0 : index
    %c0_65 = arith.constant 0 : index
    %81 = vector.load %arg9[%c2_63, %c0_64, %c0_65] : memref<3x32x32xf32, #tpu.memory_space<vmem>>, vector<1x32x32xf32>
    %82 = vector.shape_cast %81 : vector<1x32x32xf32> to vector<32x32xf32>
    %cst_66 = arith.constant dense<0.000000e+00> : vector<2x32xf32>
    %83 = tpu.matmul %3, %82, %cst_66 {dimension_numbers = #tpu.dot_dimension_numbers<[1], [0], [0], [1], [0, 0, 1, 1], [], []>} : vector<2x32xf32>, vector<32x32xf32>, vector<2x32xf32> -> vector<2x32xf32>
    %c2_67 = arith.constant 2 : index
    %c0_68 = arith.constant 0 : index
    %c0_69 = arith.constant 0 : index
    %84 = vector.load %arg11[%c2_67, %c0_68, %c0_69] : memref<3x1x32xf32, #tpu.memory_space<vmem>>, vector<1x1x32xf32>
    %85 = vector.shape_cast %84 : vector<1x1x32xf32> to vector<1x32xf32>
    %86 = vector.broadcast %85 : vector<1x32xf32> to vector<2x32xf32>
    %87 = arith.addf %83, %86 : vector<2x32xf32>
    %88 = arith.addf %52, %73 : vector<2x32xf32>
    %89 = arith.negf %88 : vector<2x32xf32>
    %90 = math.exp %89 : vector<2x32xf32>
    %cst_70 = arith.constant 1.000000e+00 : f32
    %91 = vector.broadcast %cst_70 : f32 to vector<2x32xf32>
    %92 = arith.addf %91, %90 : vector<2x32xf32>
    %93 = arith.divf %91, %92 : vector<2x32xf32>
    %94 = arith.addf %59, %80 : vector<2x32xf32>
    %95 = arith.negf %94 : vector<2x32xf32>
    %96 = math.exp %95 : vector<2x32xf32>
    %cst_71 = arith.constant 1.000000e+00 : f32
    %97 = vector.broadcast %cst_71 : f32 to vector<2x32xf32>
    %98 = arith.addf %97, %96 : vector<2x32xf32>
    %99 = arith.divf %97, %98 : vector<2x32xf32>
    %100 = arith.mulf %93, %87 : vector<2x32xf32>
    %101 = arith.addf %66, %100 : vector<2x32xf32>
    %102 = math.tanh %101 : vector<2x32xf32>
    %cst_72 = arith.constant 1.000000e+00 : f32
    %103 = vector.broadcast %cst_72 : f32 to vector<2x32xf32>
    %104 = arith.subf %103, %99 : vector<2x32xf32>
    %105 = arith.mulf %104, %102 : vector<2x32xf32>
    %106 = arith.mulf %99, %3 : vector<2x32xf32>
    %107 = arith.addf %105, %106 : vector<2x32xf32>
    %c0_73 = arith.constant 0 : index
    %c0_74 = arith.constant 0 : index
    %108 = vector.load %arg17[%c0_73, %c0_74] : memref<2x32xf32, #tpu.memory_space<vmem>>, vector<2x32xf32>
    tpu.vector_store %arg17[%c0_73, %c0_74], %107 {strides = array<i32>} : memref<2x32xf32, #tpu.memory_space<vmem>>, vector<2x32xf32>,
    %c0_75 = arith.constant 0 : index
    %c0_76 = arith.constant 0 : index
    %109 = vector.load %arg16[%c0_75, %c0_76] : memref<2x32xf32, #tpu.memory_space<vmem>>, vector<2x32xf32>
    tpu.vector_store %arg16[%c0_75, %c0_76], %107 {strides = array<i32>} : memref<2x32xf32, #tpu.memory_space<vmem>>, vector<2x32xf32>,
    %c0_77 = arith.constant 0 : index
    %c0_78 = arith.constant 0 : index
    %110 = vector.load %arg12[%c0_77, %c0_78] : memref<32x128xf32, #tpu.memory_space<vmem>>, vector<32x128xf32>
    %cst_79 = arith.constant dense<0.000000e+00> : vector<2x128xf32>
    %111 = tpu.matmul %107, %110, %cst_79 {dimension_numbers = #tpu.dot_dimension_numbers<[1], [0], [0], [1], [0, 0, 1, 1], [], []>} : vector<2x32xf32>, vector<32x128xf32>, vector<2x128xf32> -> vector<2x128xf32>
    %c0_80 = arith.constant 0 : index
    %c0_81 = arith.constant 0 : index
    %112 = vector.load %arg13[%c0_80, %c0_81] : memref<1x128xf32, #tpu.memory_space<vmem>>, vector<1x128xf32>
    %113 = vector.broadcast %112 : vector<1x128xf32> to vector<2x128xf32>
    %114 = arith.addf %111, %113 : vector<2x128xf32>
    %cst_82 = arith.constant dense<0xFF800000> : vector<2xf32>
    %115 = vector.multi_reduction <maximumf>, %114, %cst_82 [1] : vector<2x128xf32> to vector<2xf32>
    %116 = vector.shape_cast %115 : vector<2xf32> to vector<2x1xf32>
    %117 = vector.broadcast %116 : vector<2x1xf32> to vector<2x128xf32>
    %118 = arith.subf %114, %117 : vector<2x128xf32>
    %119 = math.exp %118 : vector<2x128xf32>
    %cst_83 = arith.constant dense<0.000000e+00> : vector<2xf32>
    %120 = vector.multi_reduction <add>, %119, %cst_83 [1] : vector<2x128xf32> to vector<2xf32>
    %121 = vector.shape_cast %120 : vector<2xf32> to vector<2x1xf32>
    %122 = math.log %121 : vector<2x1xf32>
    %123 = arith.addf %116, %122 : vector<2x1xf32>
    %124 = vector.broadcast %123 : vector<2x1xf32> to vector<2x128xf32>
    %125 = arith.subf %114, %124 : vector<2x128xf32>
    %c0_84 = arith.constant 0 : index
    %c0_85 = arith.constant 0 : index
    %c0_86 = arith.constant 0 : index
    %126 = vector.load %arg14[%c0_84, %c0_85, %c0_86] : memref<1x2x128xf32, #tpu.memory_space<vmem>>, vector<1x2x128xf32>
    %127 = vector.shape_cast %126 : vector<1x2x128xf32> to vector<2x128xf32>
    %128 = vector.shape_cast %125 : vector<2x128xf32> to vector<1x2x128xf32>
    tpu.vector_store %arg14[%c0_84, %c0_85, %c0_86], %128 {strides = array<i32>} : memref<1x2x128xf32, #tpu.memory_space<vmem>>, vector<1x2x128xf32>,
    return
  }
  func.func @transform_0(%arg0: i32) -> (i32, i32, i32) {
    %c0_i32 = arith.constant 0 : i32
    %c0_i32_0 = arith.constant 0 : i32
    %c0_i32_1 = arith.constant 0 : i32
    return %arg0, %c0_i32, %c0_i32_0 : i32, i32, i32
  }
  func.func @transform_1(%arg0: i32) -> (i32, i32) {
    %c0_i32 = arith.constant 0 : i32
    %c0_i32_0 = arith.constant 0 : i32
    %c0_i32_1 = arith.constant 0 : i32
    return %c0_i32, %c0_i32_0 : i32, i32
  }
  func.func @transform_2(%arg0: i32) -> (i32, i32, i32) {
    %c0_i32 = arith.constant 0 : i32
    %c0_i32_0 = arith.constant 0 : i32
    %c0_i32_1 = arith.constant 0 : i32
    %c0_i32_2 = arith.constant 0 : i32
    return %c0_i32, %c0_i32_0, %c0_i32_1 : i32, i32, i32
  }
  func.func @transform_3(%arg0: i32) -> (i32, i32, i32) {
    %c0_i32 = arith.constant 0 : i32
    %c0_i32_0 = arith.constant 0 : i32
    %c0_i32_1 = arith.constant 0 : i32
    %c0_i32_2 = arith.constant 0 : i32
    return %c0_i32, %c0_i32_0, %c0_i32_1 : i32, i32, i32
  }
  func.func @transform_4(%arg0: i32) -> (i32, i32) {
    %c0_i32 = arith.constant 0 : i32
    %c0_i32_0 = arith.constant 0 : i32
    %c0_i32_1 = arith.constant 0 : i32
    return %c0_i32, %c0_i32_0 : i32, i32
  }
  func.func @transform_5(%arg0: i32) -> (i32, i32, i32) {
    %c0_i32 = arith.constant 0 : i32
    %c0_i32_0 = arith.constant 0 : i32
    %c0_i32_1 = arith.constant 0 : i32
    %c0_i32_2 = arith.constant 0 : i32
    return %c0_i32, %c0_i32_0, %c0_i32_1 : i32, i32, i32
  }
  func.func @transform_6(%arg0: i32) -> (i32, i32) {
    %c0_i32 = arith.constant 0 : i32
    %c0_i32_0 = arith.constant 0 : i32
    %c0_i32_1 = arith.constant 0 : i32
    return %c0_i32, %c0_i32_0 : i32, i32
  }
  func.func @transform_7(%arg0: i32) -> (i32, i32, i32) {
    %c0_i32 = arith.constant 0 : i32
    %c0_i32_0 = arith.constant 0 : i32
    %c0_i32_1 = arith.constant 0 : i32
    %c0_i32_2 = arith.constant 0 : i32
    return %c0_i32, %c0_i32_0, %c0_i32_1 : i32, i32, i32
  }
  func.func @transform_8(%arg0: i32) -> (i32, i32, i32) {
    %c0_i32 = arith.constant 0 : i32
    %c0_i32_0 = arith.constant 0 : i32
    %c0_i32_1 = arith.constant 0 : i32
    %c0_i32_2 = arith.constant 0 : i32
    return %c0_i32, %c0_i32_0, %c0_i32_1 : i32, i32, i32
  }
  func.func @transform_9(%arg0: i32) -> (i32, i32, i32) {
    %c0_i32 = arith.constant 0 : i32
    %c0_i32_0 = arith.constant 0 : i32
    %c0_i32_1 = arith.constant 0 : i32
    %c0_i32_2 = arith.constant 0 : i32
    return %c0_i32, %c0_i32_0, %c0_i32_1 : i32, i32, i32
  }
  func.func @transform_10(%arg0: i32) -> (i32, i32, i32) {
    %c0_i32 = arith.constant 0 : i32
    %c0_i32_0 = arith.constant 0 : i32
    %c0_i32_1 = arith.constant 0 : i32
    %c0_i32_2 = arith.constant 0 : i32
    return %c0_i32, %c0_i32_0, %c0_i32_1 : i32, i32, i32
  }
  func.func @transform_11(%arg0: i32) -> (i32, i32) {
    %c0_i32 = arith.constant 0 : i32
    %c0_i32_0 = arith.constant 0 : i32
    %c0_i32_1 = arith.constant 0 : i32
    return %c0_i32, %c0_i32_0 : i32, i32
  }
  func.func @transform_12(%arg0: i32) -> (i32, i32) {
    %c0_i32 = arith.constant 0 : i32
    %c0_i32_0 = arith.constant 0 : i32
    %c0_i32_1 = arith.constant 0 : i32
    return %c0_i32, %c0_i32_0 : i32, i32
  }
  func.func @transform_13(%arg0: i32) -> (i32, i32, i32) {
    %c0_i32 = arith.constant 0 : i32
    %c0_i32_0 = arith.constant 0 : i32
    %c0_i32_1 = arith.constant 0 : i32
    return %arg0, %c0_i32, %c0_i32_0 : i32, i32, i32
  }
  func.func @transform_14(%arg0: i32) -> (i32, i32, i32) {
    %c0_i32 = arith.constant 0 : i32
    %c0_i32_0 = arith.constant 0 : i32
    %c0_i32_1 = arith.constant 0 : i32
    return %arg0, %c0_i32, %c0_i32_0 : i32, i32, i32
  }
  func.func @transform_15(%arg0: i32) -> (i32, i32) {
    %c0_i32 = arith.constant 0 : i32
    %c0_i32_0 = arith.constant 0 : i32
    %c0_i32_1 = arith.constant 0 : i32
    return %c0_i32, %c0_i32_0 : i32, i32
  }
}

</mosaic_0001>

<bundles_post_ra>
// kernel: attention_decode_fused.1
= control target key start
LH: loop header
LB: loop body
LE: loop exit
PB: predicated region body
PF: predicated region fallthrough
CT: control target
= control target key end

     0   :  { %s1013_s0 = inlined_call_operand.vmem [shape: f32[1,2,32], index: 0, kind: input, shape index: {}]   ;;  %s1014_s1 = inlined_call_operand.vmem [shape: f32[2,32], index: 1, kind: input, shape index: {}]   ;;  %s1015_s2 = inlined_call_operand.vmem [shape: f32[2,8,32], index: 2, kind: input, shape index: {}]   ;;  %s1016_s3 = inlined_call_operand.vmem [shape: f32[1,1,32], index: 3, kind: input, shape index: {}]   ;;  %s1017_s4 = inlined_call_operand.<no memory space> [shape: f32[1,1], index: 4, kind: input, shape index: {}]   ;;  %s1018_s5 = inlined_call_operand.vmem [shape: f32[2,32,32], index: 5, kind: input, shape index: {}]   ;;  %s1019_s6 = inlined_call_operand.vmem [shape: f32[1,32], index: 6, kind: input, shape index: {}]   ;;  %s1020_s7 = inlined_call_operand.vmem [shape: f32[3,32,32], index: 7, kind: input, shape index: {}]   ;;  %s1021_s8 = inlined_call_operand.vmem [shape: f32[3,32,32], index: 8, kind: input, shape index: {}]   ;;  %s1022_s9 = inlined_call_operand.vmem [shape: f32[3,1,32], index: 9, kind: input, shape index: {}]   ;;  %s1023_s10 = inlined_call_operand.vmem [shape: f32[3,1,32], index: 10, kind: input, shape index: {}]   ;;  %s1024_s11 = inlined_call_operand.vmem [shape: f32[32,128], index: 11, kind: input, shape index: {}]   ;;  %s1025_s12 = inlined_call_operand.vmem [shape: f32[1,128], index: 12, kind: input, shape index: {}]   ;;  %s1026_s13 = inlined_call_operand.hbm [shape: f32[1,2,128], index: 13, kind: output, shape index: {0}]   ;;  %s1027_s14 = inlined_call_operand.hbm [shape: f32[1,2,8], index: 14, kind: output, shape index: {1}]   ;;  %s1028_s15 = inlined_call_operand.hbm [shape: f32[2,32], index: 15, kind: output, shape index: {2}]  }
   0x1   :  { %v21_v0 = vstv %s1017_s4 }
   0x2   :  { %22 = vst [vmem:[#allocation3] sm:$0x1] %v21_v0 }
   0x3   :  { %23 = vsyncpa [#allocation5], 0  ;;  %v55_v1 = vld [vmem:[%s1014_s1] sm:$0x3]  ;;  %vm56_vm0 = vcmask 254976   ;;  %v741_v2 = vmov 0  }
   0x4   :  { %628 = vset.pattern.permute.xlu1 %v741_v2  ;;  %57 = vst.msk [vmem:[#allocation2] sm:$0x3] %vm56_vm0, %v55_v1  ;;  %v60_v3 = vld [vmem:[%s1015_s2] sm:$0xff]  ;;  %629 = vset.pattern.permute.xlu2 %v741_v2  ;;  %v61_v5 = vld [vmem:[%s1015_s2 + $0x8] sm:$0xff] }
   0x5   :  { %630 = vset.pattern.permute.xlu0 %v741_v2  ;;  %172 = vmatpush.msra.mxu0 %v60_v3 }
   0x6   :  { %194 = vmatpush.msra.mxu1 %v61_v5 }
   0x9   :  { %v632_v4 = vld [vmem:[#allocation3] ss:$0 sm:$0xff] }
   0xa   :  { %89 = vperm.xlu1 %628, %v632_v4  }
   0xb   :  { %24 = vsyncpa [#allocation7], 0  ;;  %v838_v6 = vld [vmem:[#allocation2] sm:$0x3]  ;;  %vm78_vm1 = vcmask 261120   ;;  %v96_v20 = vlaneseq  ;;  %vm100_vm2 = vcmask 1041409  }
   0xc   :  { %v64_v7 = vperm.slane %v838_v6, 0  ;;  %v63_v8 = vrot.slane %v838_v6, 1  ;;  %v631_v12 = vld [vmem:[%s1016_s3] ss:$0 sm:$0xff]  ;;  %vm103_vm3 = vcmask 58368   ;;  %vm154_vm4 = vcmask 64512  }
   0xd   :  { %v97_v22 = vand.u32 127, %v96_v20  ;;  %v592_v56 = vld [vmem:[%s1018_s5 + $0x38] sm:$0xff]  ;;  %v591_v58 = vld [vmem:[%s1018_s5 + $0x30] sm:$0xff]  ;;  %v590_v60 = vld [vmem:[%s1018_s5 + $0x28] sm:$0xff]  ;;  %vm525_vm13 = vcmask 1041408   ;;  %s558_s27 = sshll.u32 %s1027_s14, 4  ;;  %s559_s27 = int_to_ptr.hbm [resolvable:$true] %s558_s27 }
   0xe   :  { %v68_v9 = vadd.f32 %v64_v7, %v60_v3  ;;  %v65_v10 = vperm.slane %v63_v8, 0  ;;  %v202_v57 = vld [vmem:[%s1018_s5 + $0x18] sm:$0xff]  ;;  %226 = vmatpush.msra.mxu2 %v592_v56  ;;  %v201_v59 = vld [vmem:[%s1018_s5 + $0x10] sm:$0xff]  ;;  %v200_v61 = vld [vmem:[%s1018_s5 + $0x8] sm:$0xff]  ;;  %s742_s28 = smov [#allocation6]   ;;  %s744_s14 = smov [#allocation4]  }
   0xf   :  { %249 = vmatpush.msra.mxu3 %v202_v57  ;;  %v589_v62 = vld [vmem:[%s1018_s5 + $0x20] sm:$0xff]  ;;  %v357_v1 = vld [vmem:[%s1021_s8 + $0x18] sm:$0xff]  ;;  %v356_v2 = vld [vmem:[%s1021_s8 + $0x10] sm:$0xff]  ;;  %s545_s30 = sshll.u32 %s744_s14, 4  ;;  %s547_s18 = sshll.u32 %s1026_s13, 4  ;;  %s546_s30 = int_to_ptr.vmem [resolvable:$true] %s545_s30  ;;  %s548_s18 = int_to_ptr.hbm [resolvable:$true] %s547_s18 }
  0x10   :  { %641 = vtanh.f32 %v68_v9  ;;  %v69_v11 = vadd.f32 %v65_v10, %v61_v5  ;;  %227 = vmatpush.msra.mxu2 %v591_v58  ;;  %v199_v63 = vld [vmem:[%s1018_s5] sm:$0xff]  ;;  %v266_v3 = vld [vmem:[%s1020_s7 + $0x18] sm:$0xff]  ;;  %v355_v4 = vld [vmem:[%s1021_s8 + $0x8] sm:$0xff]  ;;  %s556_s5 = sshll.u32 %s742_s28, 4  ;;  %s557_s5 = int_to_ptr.vmem [resolvable:$true] %s556_s5 }
  0x11   :  { %250 = vmatpush.msra.mxu3 %v201_v59  ;;  %v59_v0 = vld [vmem:[%s1013_s0] sm:$0x3]  ;;  %286 = vmatpush.msrb.mxu0 %v266_v3  ;;  %s569_s0 = sshll.u32 %s1028_s15, 4  ;;  %s570_s0 = int_to_ptr.hbm [resolvable:$true] %s569_s0 }
  0x12   :  { %643 = vtanh.f32 %v69_v11  ;;  %228 = vmatpush.msra.mxu2 %v590_v60  ;;  %v354_v5 = vld [vmem:[%s1021_s8] sm:$0xff]  ;;  %v599_v11 = vld [vmem:[%s1020_s7 + $0x38] sm:$0xff] }
  0x13   :  { %251 = vmatpush.msra.mxu3 %v200_v61  ;;  %316 = vmatpush.msrb.mxu1 %v599_v11  ;;  %v596_v20 = vld [vmem:[%s1020_s7 + $0x20] sm:$0xff] }
  0x14   :  { %229 = vmatpush.msra.mxu2 %v589_v62  ;;  %v494_v56 = vld [vmem:[%s1024_s11] sm:$0xff] }
  0x15   :  { %252 = vmatpush.msra.mxu3 %v199_v63  ;;  %v639_v62 = vld [vmem:[%s1023_s10 + $0x2] ss:$0 sm:$0xff] }
  0x16   :  { %v642_v13 = vpop.eup %641  ;;  %594 = vmatmul.msk.f32.vlgmr.msra.gmra.mxu3 %vm78_vm1, %v59_v0 }
  0x17   :  { %v76_v14 = vmul.f32 %v642_v13, %v631_v12  ;;  %376 = vmatpush.msrb.mxu3 %v357_v1  ;;  %v265_v13 = vld [vmem:[%s1020_s7 + $0x10] sm:$0xff] }
  0x18   :  { %v644_v15 = vpop.eup %643  ;;  %287 = vmatpush.msrb.mxu0 %v265_v13 }
  0x19   :  { %v79_v16 = vsel %vm78_vm1, %v76_v14, 0.0  ;;  %v77_v17 = vmul.f32 %v644_v15, %v631_v12  ;;  %377 = vmatpush.msrb.mxu3 %v356_v2  ;;  %v605_v12 = vld [vmem:[%s1020_s7 + $0x58] sm:$0xff]  ;;  %v598_v14 = vld [vmem:[%s1020_s7 + $0x30] sm:$0xff] }
  0x1a   :  { %80 = vadd.xlane.f32.xlu0 %v79_v16  ;;  %346 = vmatpush.msrb.mxu2 %v605_v12  ;;  %v604_v15 = vld [vmem:[%s1020_s7 + $0x50] sm:$0xff]  ;;  %v264_v16 = vld [vmem:[%s1020_s7 + $0x8] sm:$0xff] }
  0x1b   :  { %v82_v18 = vsel %vm78_vm1, %v77_v17, 0.0  ;;  %378 = vmatpush.msrb.mxu3 %v355_v4  ;;  %317 = vmatpush.msrb.mxu1 %v598_v14  ;;  %v597_v17 = vld [vmem:[%s1020_s7 + $0x28] sm:$0xff]  ;;  %v637_v4 = vld [vmem:[%s1022_s9 + $0x2] ss:$0 sm:$0xff] }
  0x1c   :  { %347 = vmatpush.msrb.mxu2 %v604_v15  ;;  %288 = vmatpush.msrb.mxu0 %v264_v16 }
  0x1d   :  { %379 = vmatpush.msrb.mxu3 %v354_v5  ;;  %318 = vmatpush.msrb.mxu1 %v597_v17 }
  0x1e   :  { %608 = vmatmul.msk.f32.vlgmr.msrb.gmra.mxu3 %vm78_vm1, %v838_v6 }
  0x1f   :  { %319 = vmatpush.msrb.mxu1 %v596_v20 }
  0x22   :  { %83 = vadd.xlane.f32.xlu0 %v82_v18  ;;  %v603_v18 = vld [vmem:[%s1020_s7 + $0x48] sm:$0xff] }
  0x23   :  { %348 = vmatpush.msrb.mxu2 %v603_v18 }
  0x7c   :  { %v90_v21 = vpop.permute.xlu1 %89 }
  0x8d   :  { %v81_v19 = vpop.xlane.xlu0 %80 }
  0x8e   :  { %v92_v23 = vadd.f32 %v90_v21, %v81_v19  ;;  %v263_v19 = vld [vmem:[%s1020_s7] sm:$0xff] }
  0x8f   :  { %289 = vmatpush.msrb.mxu0 %v263_v19 }
  0x90   :  { %v98_v26 = vperm.slane %v92_v23, %v97_v22 }
  0x95   :  { %v84_v24 = vpop.xlane.xlu0 %83 }
  0x96   :  { %v93_v25 = vadd.f32 %v90_v21, %v84_v24  ;;  %v602_v21 = vld [vmem:[%s1020_s7 + $0x40] sm:$0xff]  ;;  %v610_v24 = vld [vmem:[%s1021_s8 + $0x28] sm:$0xff] }
  0x97   :  { %349 = vmatpush.msrb.mxu2 %v602_v21 }
  0x98   :  { %v99_v27 = vperm.slane %v93_v25, %v97_v22 }
  0x9a   :  { %v101_v28 = vsel %vm100_vm2, %v99_v27, %v98_v26  ;;  %v618_v26 = vld [vmem:[%s1021_s8 + $0x58] sm:$0xff]  ;;  %v617_v27 = vld [vmem:[%s1021_s8 + $0x50] sm:$0xff] }
  0x9b   :  { %v104_v29 = vsel %vm103_vm3, %v101_v28, -inf  ;;  %v616_v28 = vld [vmem:[%s1021_s8 + $0x48] sm:$0xff] }
  0x9c   :  { %105 = vmax.xlane.f32.xlu1 %v104_v29  ;;  %v615_v29 = vld [vmem:[%s1021_s8 + $0x40] sm:$0xff] }
 0x10f   :  { %v106_v30 = vpop.xlane.xlu1 %105 }
 0x110   :  { %v108_v31 = vperm.slane %v106_v30, 0  ;;  %v109_v32 = vperm.slane %v106_v30, 1  ;;  %v254_v30 = vpop.f32.mrf.mxu3 }
 0x112   :  { %v112_v33 = vsub.f32 %v92_v23, %v108_v31  ;;  %v113_v35 = vsub.f32 %v93_v25, %v109_v32  ;;  %v611_v23 = vld [vmem:[%s1021_s8 + $0x30] sm:$0xff]  ;;  %v609_v25 = vld [vmem:[%s1021_s8 + $0x20] sm:$0xff] }
 0x113   :  { %v633_v31 = vld [vmem:[%s1019_s6] ss:$0 sm:$0xff] }
 0x114   :  { %v114_v34 = vmul.f32 1.442695, %v112_v33  ;;  %v116_v36 = vmul.f32 1.442695, %v113_v35 }
 0x116   :  { %645 = vpow2.f32 %v114_v34 }
 0x117   :  { %647 = vpow2.f32 %v116_v36  ;;  %v636_v36 = vld [vmem:[%s1023_s10] ss:$0 sm:$0xff] }
 0x11c   :  { %v646_v37 = vpop.eup %645 }
 0x11d   :  { %121 = vperm.xlu2 %629, %v646_v37   ;;  %v648_v38 = vpop.eup %647 }
 0x125   :  { %124 = vperm.xlu2 %629, %v648_v38  }
 0x177   :  { %v122_v39 = vpop.permute.xlu2 %121 }
 0x178   :  { %v126_v41 = vperm.slane %v122_v39, %v97_v22 }
 0x17f   :  { %v125_v40 = vpop.permute.xlu2 %124 }
 0x180   :  { %v127_v42 = vperm.slane %v125_v40, %v97_v22 }
 0x182   :  { %v128_v43 = vsel %vm100_vm2, %v127_v42, %v126_v41 }
 0x183   :  { %v130_v44 = vsel %vm103_vm3, %v128_v43, 0.0  ;;  %v635_v43 = vld [vmem:[%s1022_s9 + $0x1] ss:$0 sm:$0xff] }
 0x184   :  { %131 = vadd.xlane.f32.xlu0 %v130_v44 }
 0x1f7   :  { %v132_v45 = vpop.xlane.xlu0 %131 }
 0x1f8   :  { %649 = vrcp.f32 %v132_v45  ;;  %v638_v45 = vld [vmem:[%s1023_s10 + $0x1] ss:$0 sm:$0xff] }
 0x1fe   :  { %v650_v46 = vpop.eup %649 }
 0x1ff   :  { %v136_v47 = vperm.slane %v650_v46, 1  ;;  %v135_v48 = vperm.slane %v650_v46, 0 }
 0x201   :  { %v140_v49 = vmul.f32 %v648_v38, %v136_v47  ;;  %v139_v50 = vmul.f32 %v646_v37, %v135_v48  ;;  %v381_v37 = vpop.f32.mrf.mxu3  ;;  %v634_v38 = vld [vmem:[%s1022_s9] ss:$0 sm:$0xff] }
 0x202   :  { %v382_v39 = vadd.f32 %v636_v36, %v381_v37 }
 0x203   :  { %147 = vperm.xlu2 %629, %v140_v49   ;;  %144 = vperm.xlu0 %630, %v139_v50   ;;  %v497_v50 = vld [vmem:[%s1024_s11 + $0x18] sm:$0xff] }
 0x25d   :  { %v148_v51 = vpop.permute.xlu2 %147 }
 0x25e   :  { %v150_v52 = vperm.slane %v148_v51, %v97_v22 }
 0x260   :  { %588 = vmatmul.msk.f32.vlgmr.msra.gmra.mxu1 %vm154_vm4, %v150_v52 }
 0x261   :  { %436 = vmatpush.msra.mxu1 %v618_v26 }
 0x263   :  { %437 = vmatpush.msra.mxu1 %v617_v27 }
 0x265   :  { %438 = vmatpush.msra.mxu1 %v616_v28 }
 0x267   :  { %439 = vmatpush.msra.mxu1 %v615_v29 }
 0x275   :  { %v145_v53 = vpop.permute.xlu0 %144 }
 0x276   :  { %v149_v54 = vperm.slane %v145_v53, %v97_v22  ;;  %v612_v22 = vld [vmem:[%s1021_s8 + $0x38] sm:$0xff]  ;;  %v495_v53 = vld [vmem:[%s1024_s11 + $0x8] sm:$0xff] }
 0x278   :  { %587 = vmatmul.msk.f32.vlgmr.msra.gmra.mxu0 %vm154_vm4, %v149_v54  ;;  %v151_v55 = vsel %vm100_vm2, %v150_v52, %v149_v54  ;;  %v496_v52 = vld [vmem:[%s1024_s11 + $0x10] sm:$0xff] }
 0x279   :  { %153 = vst.msk [vmem:[#allocation6] sm:$0x3] %vm103_vm3, %v151_v55  ;;  %406 = vmatpush.msra.mxu0 %v612_v22 }
 0x27a   :  { %561 = dma.vmem_to_hbm [thread:$0]  %s557_s5, 32, %s559_s27, [#allocation7]  }
 0x27b   :  { %407 = vmatpush.msra.mxu0 %v611_v23 }
 0x27d   :  { %408 = vmatpush.msra.mxu0 %v610_v24 }
 0x27f   :  { %409 = vmatpush.msra.mxu0 %v609_v25 }
 0x2dd   :  { %v196_v7 = vpop.f32.mrf.mxu1 }
 0x2de   :  { %v210_v8 = vrot.slane %v196_v7, 7 }
 0x2f5   :  { %v174_v9 = vpop.f32.mrf.mxu0 }
 0x2f6   :  { %v211_v10 = vsel %vm100_vm2, %v210_v8, %v174_v9 }
 0x2f7   :  { %593 = vmatmul.msk.f32.vlgmr.msra.gmra.mxu2 %vm78_vm1, %v211_v10 }
 0x2f8   :  { %517 = vmatpush.msra.mxu2 %v497_v50 }
 0x2fa   :  { %518 = vmatpush.msra.mxu2 %v496_v52 }
 0x2fc   :  { %519 = vmatpush.msra.mxu2 %v495_v53 }
 0x2fe   :  { %520 = vmatpush.msra.mxu2 %v494_v56 }
 0x37a   :  { %v231_v32 = vpop.f32.mrf.mxu2 }
 0x37b   :  { %v255_v33 = vadd.f32 %v254_v30, %v231_v32  ;;  %v640_v30 = vld [vmem:[%s1025_s12] ss:$0 sm:$0xff]  ;;  %s743_s12 = smov [#allocation8]  }
 0x37c   :  { %s567_s8 = sshll.u32 %s743_s12, 4  ;;  %s568_s8 = int_to_ptr.vmem [resolvable:$true] %s567_s8 }
 0x37d   :  { %v261_v34 = vadd.f32 %v633_v31, %v255_v33 }
 0x37f   :  { %v262_v35 = vmax.f32 %v261_v34, 0.0 }
 0x381   :  { %595 = vmatmul.msk.f32.vlgmr.msrb.gmra.mxu0 %vm78_vm1, %v262_v35  ;;  %601 = vmatmul.msk.f32.vlgmr.msrb.gmra.mxu1 %vm78_vm1, %v262_v35 }
 0x382   :  { %607 = vmatmul.msk.f32.vlgmr.msrb.gmra.mxu2 %vm78_vm1, %v262_v35 }
 0x389   :  { %614 = vmatmul.msk.f32.vlgmr.msra.gmra.mxu0 %vm78_vm1, %v838_v6  ;;  %620 = vmatmul.msk.f32.vlgmr.msra.gmra.mxu1 %vm78_vm1, %v838_v6 }
 0x3fe   :  { %v291_v40 = vpop.f32.mrf.mxu0  ;;  %v321_v46 = vpop.f32.mrf.mxu1 }
 0x3ff   :  { %v292_v41 = vadd.f32 %v634_v38, %v291_v40  ;;  %v322_v48 = vadd.f32 %v635_v43, %v321_v46 }
 0x401   :  { %v444_v42 = vadd.f32 %v382_v39, %v292_v41 }
 0x403   :  { %v621_v44 = vmul.f32 -1.442695, %v444_v42 }
 0x405   :  { %651 = vpow2.f32 %v621_v44  ;;  %v351_v9 = vpop.f32.mrf.mxu2 }
 0x406   :  { %v411_v47 = vpop.f32.mrf.mxu0  ;;  %v441_v0 = vpop.f32.mrf.mxu1  ;;  %v352_v14 = vadd.f32 %v637_v4, %v351_v9 }
 0x407   :  { %v412_v49 = vadd.f32 %v638_v45, %v411_v47  ;;  %v442_v5 = vadd.f32 %v639_v62, %v441_v0 }
 0x409   :  { %v464_v51 = vadd.f32 %v412_v49, %v322_v48 }
 0x40b   :  { %v652_v54 = vpop.eup %651  ;;  %v622_v55 = vmul.f32 -1.442695, %v464_v51 }
 0x40c   :  { %v448_v57 = vadd.f32 1.0, %v652_v54 }
 0x40d   :  { %653 = vpow2.f32 %v622_v55 }
 0x40e   :  { %655 = vrcp.f32 %v448_v57  ;;  %v460_v1 = vand.u32 2147483648, %v448_v57  ;;  %v458_v3 = vand.u32 2147483647, %v448_v57  ;;  %vm454_vm6 = vweird.f32 %v448_v57 }
 0x410   :  { %v461_v10 = vor.u32 1.1754944e-38, %v460_v1  ;;  %vm459_vm8 = vcmp.eq.f32.partialorder %v458_v3, 8.507059e+37 }
 0x413   :  { %v654_v58 = vpop.eup %653 }
 0x414   :  { %v656_v59 = vpop.eup %655  ;;  %v468_v60 = vadd.f32 1.0, %v654_v58 }
 0x415   :  { %v450_v61 = vmul.f32 %v656_v59, %v448_v57  ;;  %vm455_vm5 = vweird.f32 %v656_v59 }
 0x416   :  { %657 = vrcp.f32 %v468_v60  ;;  %vm456_vm7 = vmor %vm454_vm6, %vm455_vm5  ;;  %v480_v17 = vand.u32 2147483648, %v468_v60  ;;  %v478_v19 = vand.u32 2147483647, %v468_v60  ;;  %vm474_vm10 = vweird.f32 %v468_v60 }
 0x417   :  { %v451_v63 = vsub.f32 1.0, %v450_v61 }
 0x418   :  { %v481_v22 = vor.u32 1.1754944e-38, %v480_v17  ;;  %vm479_vm12 = vcmp.eq.f32.partialorder %v478_v19, 8.507059e+37 }
 0x419   :  { %v452_v2 = vmul.f32 %v656_v59, %v451_v63 }
 0x41b   :  { %v453_v7 = vadd.f32 %v656_v59, %v452_v2 }
 0x41c   :  { %v658_v8 = vpop.eup %657 }
 0x41d   :  { %v470_v11 = vmul.f32 %v658_v8, %v468_v60  ;;  %v457_v12 = vsel %vm456_vm7, %v656_v59, %v453_v7  ;;  %vm475_vm9 = vweird.f32 %v658_v8 }
 0x41e   :  { %v462_v13 = vsel %vm459_vm8, %v461_v10, %v457_v12  ;;  %vm476_vm11 = vmor %vm474_vm10, %vm475_vm9 }
 0x41f   :  { %v471_v15 = vsub.f32 1.0, %v470_v11  ;;  %v484_v16 = vmul.f32 %v462_v13, %v442_v5 }
 0x421   :  { %v472_v18 = vmul.f32 %v658_v8, %v471_v15  ;;  %v485_v20 = vadd.f32 %v484_v16, %v352_v14 }
 0x423   :  { %v473_v21 = vadd.f32 %v658_v8, %v472_v18  ;;  %659 = vtanh.f32 %v485_v20 }
 0x425   :  { %v477_v23 = vsel %vm476_vm11, %v658_v8, %v473_v21 }
 0x426   :  { %v482_v24 = vsel %vm479_vm12, %v481_v22, %v477_v23 }
 0x427   :  { %v487_v25 = vsub.f32 1.0, %v482_v24  ;;  %v489_v28 = vmul.f32 %v482_v24, %v838_v6 }
 0x429   :  { %v660_v26 = vpop.eup %659 }
 0x42a   :  { %v488_v27 = vmul.f32 %v660_v26, %v487_v25 }
 0x42c   :  { %v490_v29 = vadd.f32 %v489_v28, %v488_v27 }
 0x42e   :  { %492 = vst.msk [vmem:[#allocation2] sm:$0x3] %vm56_vm0, %v490_v29  ;;  %623 = vmatmul.msk.f32.vlgmr.msra.gmra.mxu2 %vm78_vm1, %v490_v29 }
 0x42f   :  { %493 = vst.msk [vmem:[#allocation8] sm:$0x3] %vm56_vm0, %v490_v29 }
 0x430   :  { %572 = dma.vmem_to_hbm [thread:$0]  %s568_s8, 32, %s570_s0, [#allocation7]  }
 0x4b1   :  { %v522_v31 = vpop.f32.mrf.mxu2 }
 0x4b2   :  { %v523_v32 = vadd.f32 %v640_v30, %v522_v31 }
 0x4b4   :  { %v526_v33 = vsel %vm525_vm13, %v523_v32, -inf }
 0x4b5   :  { %527 = vmax.xlane.f32.xlu2 %v526_v33 }
 0x528   :  { %v528_v34 = vpop.xlane.xlu2 %527 }
 0x529   :  { %v529_v35 = vsub.f32 %v523_v32, %v528_v34 }
 0x52b   :  { %v530_v36 = vmul.f32 1.442695, %v529_v35 }
 0x52d   :  { %661 = vpow2.f32 %v530_v36 }
 0x533   :  { %v662_v6 = vpop.eup %661 }
 0x534   :  { %v532_v37 = vsel %vm525_vm13, %v662_v6, 0.0 }
 0x535   :  { %533 = vadd.xlane.f32.xlu1 %v532_v37 }
 0x5a8   :  { %v534_v38 = vpop.xlane.xlu1 %533 }
 0x5a9   :  { %663 = vlog2.f32 %v534_v38 }
 0x5af   :  { %v664_v39 = vpop.eup %663 }
 0x5b0   :  { %v536_v40 = vmul.f32 0.6931472, %v664_v39 }
 0x5b2   :  { %v537_v41 = vadd.f32 %v536_v40, %v528_v34 }
 0x5b4   :  { %v538_v42 = vsub.f32 %v523_v32, %v537_v41 }
 0x5b6   :  { %539 = vst [vmem:[#allocation4] sm:$0x3] %v538_v42 }
 0x5b7   :  { %550 = dma.vmem_to_hbm [thread:$0]  %s546_s30, 32, %s548_s18, [#allocation5]  }
 0x5b8   :  { %737 = dma.done.wait [#allocation5], 32  }
 0x5b9   :  { %738 = vsyncadd [#allocation5], 4294967264 }
 0x5ba   :  { %739 = dma.done.wait [#allocation7], 64  }
 0x5bb   :  { %740 = vsyncadd [#allocation7], 4294967232 }
 0x5bc   :  { %585 = vsyncpa [#allocation5], 1 }
 0x5bd   :  { %586 = vsyncpa [#allocation7], 1 }

</bundles_post_ra>
